<compile_context>
chip_gen: v5e
topology: v5e:2x2
jax: 0.10.0
libtpu: 0.0.40
codegen_flags: <defaults>
</compile_context>

<pallas_src>
import functools

import jax
import jax.numpy as jnp
from jax.experimental import pallas as pl
from jax.experimental.pallas import tpu as pltpu

BN_EPS = 1e-5


def _round_up(a: int, m: int) -> int:
    return -(-a // m) * m


def _time_mixing_kernel(x_ref, w_ref, b_ref, o_ref):
    # x_ref: (tm, L) raw input rows (BN already folded into w/b)
    # w_ref: (L, L) block-diagonal weight, matmul (in, out) layout, VMEM-resident
    # b_ref: (1, L) folded bias
    x = x_ref[...].astype(jnp.float32)
    z = jnp.dot(x, w_ref[...], preferred_element_type=jnp.float32) + b_ref[...]
    z = jnp.maximum(z, 0.0)                      # ReLU (VPU)
    # Dropout: identity (eval mode).  Residual add with raw x.
    o_ref[...] = (z + x).astype(o_ref.dtype)


def fold_and_pack_params(weight, bias, bn_params, *, target_lanes=128):
    """One-time parameter preparation (hoisted out of the per-call hot path).

    weight: (T, T) torch layout (out, in); bias: (T,);
    bn_params: (4,) f32 = [running_mean, running_var, gamma, beta].
    Returns (w_big, b_big, G): lane-packed block-diagonal weight, packed bias,
    and the number of T-wide problems packed along the lane axis.
    """
    T = weight.shape[0]
    rm, rv, gamma, beta = (bn_params[i] for i in range(4))

    # Fold eval-mode BatchNorm (scalar affine) into the linear layer.
    scale = gamma / jnp.sqrt(rv + BN_EPS)
    shift = beta - rm * scale
    w_mm = (scale * weight.T).astype(jnp.float32)                          # (in=T, out=T)
    b_fold = (bias + shift * jnp.sum(weight, axis=1)).astype(jnp.float32)  # (T,)

    # Pack G independent T-wide problems along the lane axis (keep 128 lanes).
    G = target_lanes // T if (target_lanes % T == 0) else 1
    L = G * T
    if G > 1:
        eye = jnp.eye(G, dtype=jnp.float32)
        # block-diagonal: W_big[g*T+i, h*T+o] = delta(g,h) * w_mm[i, o]
        w_big = jnp.einsum("gh,io->giho", eye, w_mm).reshape(L, L)
        b_big = jnp.tile(b_fold, G).reshape(1, L)
    else:
        w_big = w_mm
        b_big = b_fold.reshape(1, L)
    return w_big, b_big, G


def time_mixing_packed(x, w_big, b_big, *, G, tm=4096):
    """TSmixer time-mixing forward (eval mode) with pre-packed parameters.

    x: (B, C, T); w_big: (G*T, G*T); b_big: (1, G*T); G: lane-packing factor.
    """
    B, C, T = x.shape
    R = B * C
    L = w_big.shape[0]
    tm = max(8, (tm // 8) * 8)

    x2 = x.reshape(R, T)
    if R % G != 0:
        # Rare tiny pad (< G rows) so the lane packing reshape is valid.
        pad = G - R % G
        x2 = jnp.concatenate([x2, jnp.zeros((pad, T), dtype=x2.dtype)], axis=0)
    Rp = x2.shape[0]
    rows_g = Rp // G
    # Free, contiguous row-major reshape (no HBM copy).
    x_packed = x2.reshape(rows_g, L)

    # Row-tile selection:
    #  - tiny inputs: one exact block (block extent == array extent, always legal)
    #  - otherwise: multiple of 8, capped at ~half the rows so the 'parallel'
    #    grid has >=2 steps (both v7x TensorCores busy, DMA/compute overlap),
    #    and at tm (VMEM cap safe on v5e/v6e/v7x default scoped limits).
    if rows_g < 16:
        tm_eff = rows_g
    else:
        tm_eff = min(tm, _round_up(-(-rows_g // 2), 8))
    grid = (pl.cdiv(rows_g, tm_eff),)

    out_packed = pl.pallas_call(
        _time_mixing_kernel,
        out_shape=jax.ShapeDtypeStruct((rows_g, L), x.dtype),
        grid=grid,
        in_specs=[
            pl.BlockSpec((tm_eff, L), lambda i: (i, 0)),   # x rows (lane-dense)
            pl.BlockSpec((L, L), lambda i: (0, 0)),        # block-diag weight (resident)
            pl.BlockSpec((1, L), lambda i: (0, 0)),        # bias
        ],
        out_specs=pl.BlockSpec((tm_eff, L), lambda i: (i, 0)),
        compiler_params=pltpu.CompilerParams(
            dimension_semantics=("parallel",),
        ),
    )(x_packed, w_big, b_big)

    out = out_packed.reshape(Rp, T)[:R]
    return out.reshape(B, C, T)


def time_mixing(x, weight, bias, bn_params, *, tm=4096, target_lanes=128):
    """Convenience wrapper: fold/pack params then run the kernel (prefer
    calling fold_and_pack_params once at load time for repeated calls)."""
    w_big, b_big, G = fold_and_pack_params(weight, bias, bn_params,
                                           target_lanes=target_lanes)
    return time_mixing_packed(x, w_big, b_big, G=G, tm=tm)


def _reference(x, weight, bias, bn_params):
    rm, rv, gamma, beta = (bn_params[i] for i in range(4))
    y = gamma * (x - rm) / jnp.sqrt(rv + BN_EPS) + beta
    y = jnp.einsum("bct,ot->bco", y, weight) + bias
    y = jnp.maximum(y, 0.0)
    return y + x


if __name__ == "__main__":
    # Small shapes consistent with the module: batch=4, channels(features)=8,
    # in_time_steps=16.
    B, C, T = 4, 8, 16
    key = jax.random.PRNGKey(0)
    kx, kw, kb = jax.random.split(key, 3)

    x = jax.random.normal(kx, (B, C, T), dtype=jnp.float32)

    # Deterministic "kaiming_normal"-style init: N(0, sqrt(2/fan_in)).
    weight = jax.random.normal(kw, (T, T), dtype=jnp.float32) * jnp.sqrt(2.0 / T)
    bias = jax.random.normal(kb, (T,), dtype=jnp.float32) * 0.01

    # BatchNorm2d(num_features=1) buffers/params:
    # [running_mean, running_var, gamma, beta]
    bn_params = jnp.array([0.1, 1.2, 0.9, 0.05], dtype=jnp.float32)

    # One-time parameter preparation (hoisted out of the hot path).
    w_big, b_big, G = fold_and_pack_params(weight, bias, bn_params)
    w_big = jax.block_until_ready(w_big)
    b_big = jax.block_until_ready(b_big)

    fwd = jax.jit(functools.partial(time_mixing_packed, G=G, tm=4096))
    out = jax.block_until_ready(fwd(x, w_big, b_big))

    ref = _reference(x, weight, bias, bn_params)
    assert out.shape == x.shape
    assert jnp.allclose(out, ref, atol=1e-4, rtol=1e-5), "mismatch vs reference"

    print("KERNEL_OK")
</pallas_src>

<mosaic_0001>
module attributes {stable_mosaic.version = 11 : i64} {
  func.func @_time_mixing_kernel(%arg0: i32, %arg1: memref<4x128xf32, #tpu.memory_space<vmem>>, %arg2: memref<128x128xf32, #tpu.memory_space<vmem>>, %arg3: memref<1x128xf32, #tpu.memory_space<vmem>>, %arg4: memref<4x128xf32, #tpu.memory_space<vmem>>) attributes {dimension_semantics = [#tpu.dimension_semantics<parallel>], iteration_bounds = array<i64: 1>, scalar_prefetch = 0 : i64, scratch_operands = 0 : i64, tpu.core_type = #tpu.core_type<tc>, window_params = [{transform_indices = @transform_0, window_bounds = array<i64: 4, 128>}, {pipeline_mode = #tpu.pipeline_mode<synchronous>, transform_indices = @transform_1, window_bounds = array<i64: 128, 128>}, {pipeline_mode = #tpu.pipeline_mode<synchronous>, transform_indices = @transform_2, window_bounds = array<i64: 1, 128>}, {transform_indices = @transform_3, window_bounds = array<i64: 4, 128>}]} {
    %c0 = arith.constant 0 : index
    %c0_0 = arith.constant 0 : index
    %0 = vector.load %arg1[%c0, %c0_0] : memref<4x128xf32, #tpu.memory_space<vmem>>, vector<4x128xf32>
    %c0_1 = arith.constant 0 : index
    %c0_2 = arith.constant 0 : index
    %1 = vector.load %arg2[%c0_1, %c0_2] : memref<128x128xf32, #tpu.memory_space<vmem>>, vector<128x128xf32>
    %cst = arith.constant dense<0.000000e+00> : vector<4x128xf32>
    %2 = tpu.matmul %0, %1, %cst {dimension_numbers = #tpu.dot_dimension_numbers<[1], [0], [0], [1], [0, 0, 1, 1], [], []>} : vector<4x128xf32>, vector<128x128xf32>, vector<4x128xf32> -> vector<4x128xf32>
    %c0_3 = arith.constant 0 : index
    %c0_4 = arith.constant 0 : index
    %3 = vector.load %arg3[%c0_3, %c0_4] : memref<1x128xf32, #tpu.memory_space<vmem>>, vector<1x128xf32>
    %4 = vector.broadcast %3 : vector<1x128xf32> to vector<4x128xf32>
    %5 = arith.addf %2, %4 : vector<4x128xf32>
    %cst_5 = arith.constant 0.000000e+00 : f32
    %6 = vector.broadcast %cst_5 : f32 to vector<4x128xf32>
    %7 = arith.maximumf %5, %6 : vector<4x128xf32>
    %8 = arith.addf %7, %0 : vector<4x128xf32>
    %c0_6 = arith.constant 0 : index
    %c0_7 = arith.constant 0 : index
    %9 = vector.load %arg4[%c0_6, %c0_7] : memref<4x128xf32, #tpu.memory_space<vmem>>, vector<4x128xf32>
    tpu.vector_store %arg4[%c0_6, %c0_7], %8 {strides = array<i32>} : memref<4x128xf32, #tpu.memory_space<vmem>>, vector<4x128xf32>,
    return
  }
  func.func @transform_0(%arg0: i32) -> (i32, i32) {
    %c0_i32 = arith.constant 0 : i32
    %c0_i32_0 = arith.constant 0 : i32
    return %arg0, %c0_i32 : i32, i32
  }
  func.func @transform_1(%arg0: i32) -> (i32, i32) {
    %c0_i32 = arith.constant 0 : i32
    %c0_i32_0 = arith.constant 0 : i32
    %c0_i32_1 = arith.constant 0 : i32
    return %c0_i32, %c0_i32_0 : i32, i32
  }
  func.func @transform_2(%arg0: i32) -> (i32, i32) {
    %c0_i32 = arith.constant 0 : i32
    %c0_i32_0 = arith.constant 0 : i32
    %c0_i32_1 = arith.constant 0 : i32
    return %c0_i32, %c0_i32_0 : i32, i32
  }
  func.func @transform_3(%arg0: i32) -> (i32, i32) {
    %c0_i32 = arith.constant 0 : i32
    %c0_i32_0 = arith.constant 0 : i32
    return %arg0, %c0_i32 : i32, i32
  }
}

</mosaic_0001>

<bundles_post_ra>
// kernel: time_mixing_packed.1
= control target key start
LH: loop header
LB: loop body
LE: loop exit
PB: predicated region body
PF: predicated region fallthrough
CT: control target
= control target key end

     0   :  { %8 = vsyncpa [#allocation3], 0  ;;  %s109_s15 = smov [#allocation2]   ;;  %s110_s17 = smov 128   ;;  %s144_s0 = inlined_call_operand.vmem [shape: f32[4,128], index: 0, kind: input, shape index: {}]   ;;  %s145_s1 = inlined_call_operand.hbm [shape: f32[128,128], index: 1, kind: input, shape index: {}]   ;;  %s146_s2 = inlined_call_operand.vmem [shape: f32[1,128], index: 2, kind: input, shape index: {}]   ;;  %s147_s3 = inlined_call_operand.vmem [shape: f32[4,128], index: 3, kind: output, shape index: {}]  }
   0x1   :  { %s15_s14 = sshll.u32 %s145_s1, 4  ;;  %s17_s16 = sshll.u32 %s109_s15, 4  ;;  %s16_s14 = int_to_ptr.hbm [resolvable:$true] %s15_s14  ;;  %s18_s16 = int_to_ptr.vmem [resolvable:$true] %s17_s16 }
   0x2   :  { %s111_s18 = smov 8  }
   0x3   :  { %23 = dma.hbm_to_vmem [thread:$0]  %s16_s14, 2048, %s18_s16, [#allocation3], %s110_s17, %s110_s17, %s111_s18  }
   0x4   :  { %107 = dma.done.wait [#allocation3], 2048  }
   0x5   :  { %108 = vsyncadd [#allocation3], 4294965248  ;;  %v46_v0 = vld [vmem:[#allocation2 + $0x78] sm:$0xff]  ;;  %v45_v1 = vld [vmem:[#allocation2 + $0x70] sm:$0xff] }
   0x6   :  { %51 = vmatpush.msra.mxu0 %v46_v0  ;;  %v44_v2 = vld [vmem:[#allocation2 + $0x68] sm:$0xff]  ;;  %v43_v3 = vld [vmem:[#allocation2 + $0x60] sm:$0xff]  ;;  %v42_v4 = vld [vmem:[#allocation2 + $0x58] sm:$0xff] }
   0x7   :  { %v41_v5 = vld [vmem:[#allocation2 + $0x50] sm:$0xff]  ;;  %v40_v6 = vld [vmem:[#allocation2 + $0x48] sm:$0xff]  ;;  %v39_v7 = vld [vmem:[#allocation2 + $0x40] sm:$0xff] }
   0x8   :  { %52 = vmatpush.msra.mxu0 %v45_v1  ;;  %v38_v8 = vld [vmem:[#allocation2 + $0x38] sm:$0xff]  ;;  %v37_v9 = vld [vmem:[#allocation2 + $0x30] sm:$0xff]  ;;  %v36_v10 = vld [vmem:[#allocation2 + $0x28] sm:$0xff] }
   0x9   :  { %v35_v11 = vld [vmem:[#allocation2 + $0x20] sm:$0xff]  ;;  %v34_v12 = vld [vmem:[#allocation2 + $0x18] sm:$0xff]  ;;  %v33_v13 = vld [vmem:[#allocation2 + $0x10] sm:$0xff] }
   0xa   :  { %53 = vmatpush.msra.mxu0 %v44_v2  ;;  %v32_v14 = vld [vmem:[#allocation2 + $0x8] sm:$0xff]  ;;  %v31_v15 = vld [vmem:[#allocation2] sm:$0xff] }
   0xb   :  { %v30_v16 = vld [vmem:[%s144_s0] sm:$0xf] }
   0xc   :  { %54 = vmatpush.msra.mxu0 %v43_v3  ;;  %v82_v17 = vld [vmem:[%s146_s2] ss:$0 sm:$0xff] }
   0xe   :  { %55 = vmatpush.msra.mxu0 %v42_v4 }
  0x10   :  { %56 = vmatpush.msra.mxu0 %v41_v5 }
  0x12   :  { %57 = vmatpush.msra.mxu0 %v40_v6 }
  0x14   :  { %58 = vmatpush.msra.mxu0 %v39_v7 }
  0x16   :  { %59 = vmatpush.msra.mxu0 %v38_v8 }
  0x18   :  { %60 = vmatpush.msra.mxu0 %v37_v9 }
  0x1a   :  { %61 = vmatpush.msra.mxu0 %v36_v10 }
  0x1c   :  { %62 = vmatpush.msra.mxu0 %v35_v11 }
  0x1e   :  { %63 = vmatpush.msra.mxu0 %v34_v12 }
  0x20   :  { %64 = vmatpush.msra.mxu0 %v33_v13 }
  0x22   :  { %65 = vmatpush.msra.mxu0 %v32_v14 }
  0x24   :  { %66 = vmatpush.msra.mxu0 %v31_v15 }
  0x25   :  { %67 = vmatmul.f32.vlgmr.msra.gmra.mxu0 %v30_v16 }
  0xa2   :  { %v68_v18 = vpop.f32.mrf.mxu0 }
  0xa3   :  { %v69_v19 = vadd.f32 %v82_v17, %v68_v18 }
  0xa5   :  { %v71_v20 = vmax.f32 %v69_v19, 0.0 }
  0xa7   :  { %v72_v21 = vadd.f32 %v71_v20, %v30_v16 }
  0xa9   :  { %73 = vst [vmem:[%s147_s3] sm:$0xf] %v72_v21 }
  0xaa   :  { %78 = vsyncpa [#allocation3], 1 }

</bundles_post_ra>
